<compile_context>
chip_gen: v7x
topology: tpu7x:2x2x1
jax: 0.10.0
libtpu: 0.0.40
codegen_flags: <defaults>
</compile_context>

<pallas_src>
import jax
import jax.numpy as jnp
from jax.experimental import pallas as pl
from jax.experimental.pallas import tpu as pltpu

_LANES = 128          # packed output row width (16 samples x 8 features)
_MAX_TILE_ROWS = 1024 # packed rows per grid step (= 16384 samples)


def _make_kernel(s):
    """Bake the frozen quant scalars in as trace-time constants."""
    inv_x_scale = s["inv_x_scale"]
    x_lo, x_hi = s["x_lo"], s["x_hi"]
    k1 = s["k1"]
    out_lo, out_hi = s["out_lo"], s["out_hi"]
    out_scale = s["out_scale"]

    def kernel(x_ref, w_ref, b1_ref, o_ref):
        # x_ref : (tile, 256) f32   packed input, 16 samples per row
        # w_ref : (256, 128)  bf16  block-diagonal qint8 weight values
        # b1_ref: (1, 128)    f32   bias / out_scale, tiled per packed sample
        # o_ref : (tile, 128) f32   dequantized output, 16 samples per row
        # Quantize + center input (zp folded into the clip bounds; exact ints).
        x_c = jnp.clip(jnp.round(x_ref[...] * inv_x_scale), x_lo, x_hi)
        # int8-linear emulated exactly on the MXU in bf16 with f32 accumulate.
        acc = jnp.dot(x_c.astype(jnp.bfloat16), w_ref[...],
                      preferred_element_type=jnp.float32)
        # Requantize (folded scales/zp) + dequantize.
        t = jnp.clip(jnp.round(acc * k1 + b1_ref[...]), out_lo, out_hi)
        o_ref[...] = t * out_scale

    return kernel


def convert_quantized_single_layer(w, b, calib_x):
    """One-time 'torch.quantization.convert' equivalent: quantize the weight,
    freeze all observer-derived quant params, and pre-pack the block-diagonal
    weight / tiled bias for the packed kernel layout."""
    out_features, in_features = w.shape
    assert _LANES % out_features == 0
    pack = _LANES // out_features                       # 16 samples per row
    w = jnp.asarray(w, jnp.float32)
    b = jnp.asarray(b, jnp.float32)
    calib_x = jnp.asarray(calib_x, jnp.float32)

    # Weight: per-tensor symmetric qint8 (zero_point = 0).
    # TODO(synk): torch fbgemm default is per-channel symmetric; per-tensor is
    # an accuracy-level simplification only.
    w_scale = float(jnp.maximum(jnp.max(jnp.abs(w)), 1e-8)) / 127.0
    w_q = jnp.clip(jnp.round(w / w_scale), -127.0, 127.0)   # integer-valued

    # Input observer: per-tensor affine quint8 from calibrated min/max.
    x_min = float(jnp.minimum(jnp.min(calib_x), 0.0))
    x_max = float(jnp.maximum(jnp.max(calib_x), 0.0))
    x_scale = max(x_max - x_min, 1e-8) / 255.0
    x_zp = float(jnp.clip(jnp.round(-x_min / x_scale), 0.0, 255.0))

    # Output observer: from calibrated fp32 range of the linear output.
    y_fp = calib_x @ w.T + b
    y_min = float(jnp.minimum(jnp.min(y_fp), 0.0))
    y_max = float(jnp.maximum(jnp.max(y_fp), 0.0))
    out_scale = max(y_max - y_min, 1e-8) / 255.0
    out_zp = float(jnp.clip(jnp.round(-y_min / out_scale), 0.0, 255.0))

    # Block-diagonal packed weight: W_bd[16p+k, 8p+j] = W_q[j, k].
    w_bd = jnp.kron(jnp.eye(pack, dtype=jnp.float32), w_q.T)   # (256, 128)
    # Bias folded with 1/out_scale and tiled across the 16 packed samples.
    b1 = (jnp.tile(b, pack) / out_scale).reshape(1, _LANES)    # (1, 128)

    return {
        "w_bd": w_bd.astype(jnp.bfloat16),   # exact: small integer values
        "b1": b1.astype(jnp.float32),
        "w_q": w_q,                          # for the pure-JAX reference
        "bias": b,
        "scalars": {
            "inv_x_scale": 1.0 / x_scale,
            "x_lo": -x_zp, "x_hi": 255.0 - x_zp,
            "k1": (x_scale * w_scale) / out_scale,
            "out_lo": -out_zp, "out_hi": 255.0 - out_zp,
            "out_scale": out_scale,
            # kept only for test tolerances:
            "x_scale": x_scale, "w_scale": w_scale,
        },
        "in_features": in_features,
        "out_features": out_features,
        "pack": pack,
    }


def _pick_tile_rows(rows):
    """Packed-row tile: full extent when tiny, otherwise a multiple of 8 that
    keeps >= 2 grid steps (v7x megacore) and is capped for VMEM."""
    if rows <= 8:
        return rows
    tile = min(_MAX_TILE_ROWS, max(8, (((rows + 1) // 2) // 8) * 8))
    return tile


def quantized_single_layer(params, x):
    """Per-call forward: single fused Pallas kernel, no per-call calibration."""
    x = jnp.asarray(x, jnp.float32)
    batch, in_features = x.shape
    assert in_features == params["in_features"]
    pack = params["pack"]
    out_features = params["out_features"]
    packed_width = pack * in_features                     # 256

    # Pack 16 samples per row: (B, 16) -> (rows, 256), contiguous & free.
    rows = -(-batch // pack)
    if rows * pack != batch:
        # TODO(synk): handle the ragged tail in-kernel (masked store) instead
        # of this small wrapper pad (only hit when batch % 16 != 0).
        x = jnp.pad(x, ((0, rows * pack - batch), (0, 0)))
    xp = x.reshape(rows, packed_width)

    tile = _pick_tile_rows(rows)
    grid_n = -(-rows // tile)
    rows_padded = grid_n * tile
    if rows_padded != rows:
        xp = jnp.pad(xp, ((0, rows_padded - rows), (0, 0)))

    out = pl.pallas_call(
        _make_kernel(params["scalars"]),
        out_shape=jax.ShapeDtypeStruct((rows_padded, _LANES), jnp.float32),
        grid=(grid_n,),
        in_specs=[
            pl.BlockSpec((tile, packed_width), lambda i: (i, 0)),   # x tile
            pl.BlockSpec(memory_space=pltpu.MemorySpace.VMEM),      # weight
            pl.BlockSpec(memory_space=pltpu.MemorySpace.VMEM),      # bias
        ],
        out_specs=pl.BlockSpec((tile, _LANES), lambda i: (i, 0)),
        compiler_params=pltpu.CompilerParams(
            dimension_semantics=("parallel",)),
    )(xp, params["w_bd"], params["b1"])

    # (rows, 128) -> (rows*16, 8): free reshape, then drop padded rows if any.
    out = out.reshape(rows_padded * pack, out_features)
    if rows_padded * pack != batch:
        out = out[:batch]
    return out


def _reference_forward(params, x):
    """Pure-JAX reference of the same frozen quantized math (bit-exact)."""
    s = params["scalars"]
    nf = params["out_features"]
    b1 = params["b1"][0, :nf]
    x = jnp.asarray(x, jnp.float32)
    x_c = jnp.clip(jnp.round(x * s["inv_x_scale"]), s["x_lo"], s["x_hi"])
    acc = x_c @ params["w_q"].T
    t = jnp.clip(jnp.round(acc * s["k1"] + b1), s["out_lo"], s["out_hi"])
    return t * s["out_scale"]


if __name__ == "__main__":
    key = jax.random.PRNGKey(0)
    kx, kw, kb, kc = jax.random.split(key, 4)

    # Module shapes: Linear(16, 8); annotated input shape [1, 16].
    in_features, out_features = 16, 8
    bound = 1.0 / (in_features ** 0.5)   # nn.Linear default init range

    x1 = jax.random.normal(kx, (1, in_features), dtype=jnp.float32)
    x_big = jax.random.normal(kc, (48, in_features), dtype=jnp.float32)
    w = jax.random.uniform(kw, (out_features, in_features),
                           minval=-bound, maxval=bound, dtype=jnp.float32)
    b = jax.random.uniform(kb, (out_features,),
                           minval=-bound, maxval=bound, dtype=jnp.float32)

    # One-time convert/calibration (frozen params).
    params = convert_quantized_single_layer(
        w, b, calib_x=jnp.concatenate([x1, x_big], axis=0))
    s = params["scalars"]

    for x in (x1, x_big):
        out = jax.block_until_ready(quantized_single_layer(params, x))
        assert out.shape == (x.shape[0], out_features)

        # Exact check vs the pure-JAX quantized reference.
        ref_q = _reference_forward(params, x)
        assert bool(jnp.allclose(out, ref_q, atol=1e-5)), \
            "kernel output differs from quantized reference"

        # Coarse sanity vs the fp32 linear (8-bit quantization grid).
        ref_fp = x @ w.T + b
        tol = (1.0 * s["out_scale"]
               + 1.0 * s["x_scale"] * float(jnp.max(jnp.sum(jnp.abs(w), 1)))
               + 1.0 * s["w_scale"] * float(jnp.max(jnp.sum(jnp.abs(x), 1)))
               + 1e-2)
        assert float(jnp.max(jnp.abs(out - ref_fp))) < tol, \
            "quantized output too far from fp32 ref"

    print("KERNEL_OK")
</pallas_src>

<mosaic_0001>
module attributes {stable_mosaic.version = 11 : i64} {
  func.func @kernel(%arg0: i32, %arg1: memref<1x256xf32, #tpu.memory_space<vmem>>, %arg2: memref<256x128xbf16, #tpu.memory_space<vmem>>, %arg3: memref<1x128xf32, #tpu.memory_space<vmem>>, %arg4: memref<1x128xf32, #tpu.memory_space<vmem>>) attributes {dimension_semantics = [#tpu.dimension_semantics<parallel>], iteration_bounds = array<i64: 1>, scalar_prefetch = 0 : i64, scratch_operands = 0 : i64, tpu.core_type = #tpu.core_type<tc>, window_params = [{transform_indices = @transform_0, window_bounds = array<i64: 1, 256>}, {pipeline_mode = #tpu.pipeline_mode<synchronous>, transform_indices = @transform_1, window_bounds = array<i64: 256, 128>}, {pipeline_mode = #tpu.pipeline_mode<synchronous>, transform_indices = @transform_2, window_bounds = array<i64: 1, 128>}, {transform_indices = @transform_3, window_bounds = array<i64: 1, 128>}]} {
    %c0 = arith.constant 0 : index
    %c0_0 = arith.constant 0 : index
    %0 = vector.load %arg1[%c0, %c0_0] : memref<1x256xf32, #tpu.memory_space<vmem>>, vector<1x256xf32>
    %cst = arith.constant 43.299778 : f32
    %1 = vector.broadcast %cst : f32 to vector<1x256xf32>
    %2 = arith.mulf %0, %1 : vector<1x256xf32>
    %3 = math.roundeven %2 : vector<1x256xf32>
    %cst_1 = arith.constant -1.260000e+02 : f32
    %cst_2 = arith.constant 1.290000e+02 : f32
    %4 = vector.broadcast %cst_1 : f32 to vector<1x256xf32>
    %5 = arith.maximumf %4, %3 : vector<1x256xf32>
    %6 = vector.broadcast %cst_2 : f32 to vector<1x256xf32>
    %7 = arith.minimumf %6, %5 : vector<1x256xf32>
    %8 = arith.truncf %7 : vector<1x256xf32> to vector<1x256xbf16>
    %c0_3 = arith.constant 0 : index
    %c0_4 = arith.constant 0 : index
    %9 = vector.load %arg2[%c0_3, %c0_4] : memref<256x128xbf16, #tpu.memory_space<vmem>>, vector<256x128xbf16>
    %cst_5 = arith.constant dense<0.000000e+00> : vector<1x128xf32>
    %10 = tpu.matmul %8, %9, %cst_5 {dimension_numbers = #tpu.dot_dimension_numbers<[1], [0], [0], [1], [0, 0, 1, 1], [], []>} : vector<1x256xbf16>, vector<256x128xbf16>, vector<1x128xf32> -> vector<1x128xf32>
    %cst_6 = arith.constant 0.00281461957 : f32
    %11 = vector.broadcast %cst_6 : f32 to vector<1x128xf32>
    %12 = arith.mulf %10, %11 : vector<1x128xf32>
    %c0_7 = arith.constant 0 : index
    %c0_8 = arith.constant 0 : index
    %13 = vector.load %arg3[%c0_7, %c0_8] : memref<1x128xf32, #tpu.memory_space<vmem>>, vector<1x128xf32>
    %14 = arith.addf %12, %13 : vector<1x128xf32>
    %15 = math.roundeven %14 : vector<1x128xf32>
    %cst_9 = arith.constant -1.370000e+02 : f32
    %cst_10 = arith.constant 1.180000e+02 : f32
    %16 = vector.broadcast %cst_9 : f32 to vector<1x128xf32>
    %17 = arith.maximumf %16, %15 : vector<1x128xf32>
    %18 = vector.broadcast %cst_10 : f32 to vector<1x128xf32>
    %19 = arith.minimumf %18, %17 : vector<1x128xf32>
    %cst_11 = arith.constant 0.0159165487 : f32
    %20 = vector.broadcast %cst_11 : f32 to vector<1x128xf32>
    %21 = arith.mulf %19, %20 : vector<1x128xf32>
    %c0_12 = arith.constant 0 : index
    %c0_13 = arith.constant 0 : index
    %22 = vector.load %arg4[%c0_12, %c0_13] : memref<1x128xf32, #tpu.memory_space<vmem>>, vector<1x128xf32>
    tpu.vector_store %arg4[%c0_12, %c0_13], %21 {strides = array<i32>} : memref<1x128xf32, #tpu.memory_space<vmem>>, vector<1x128xf32>,
    return
  }
  func.func @transform_0(%arg0: i32) -> (i32, i32) {
    %c0_i32 = arith.constant 0 : i32
    %c0_i32_0 = arith.constant 0 : i32
    return %arg0, %c0_i32 : i32, i32
  }
  func.func @transform_1(%arg0: i32) -> (i32, i32) {
    %c0_i32 = arith.constant 0 : i32
    %c0_i32_0 = arith.constant 0 : i32
    %c0_i32_1 = arith.constant 0 : i32
    return %c0_i32, %c0_i32_0 : i32, i32
  }
  func.func @transform_2(%arg0: i32) -> (i32, i32) {
    %c0_i32 = arith.constant 0 : i32
    %c0_i32_0 = arith.constant 0 : i32
    %c0_i32_1 = arith.constant 0 : i32
    return %c0_i32, %c0_i32_0 : i32, i32
  }
  func.func @transform_3(%arg0: i32) -> (i32, i32) {
    %c0_i32 = arith.constant 0 : i32
    %c0_i32_0 = arith.constant 0 : i32
    return %arg0, %c0_i32 : i32, i32
  }
}

</mosaic_0001>

<bundles_post_ra>
// kernel: tpu_custom_call.1
= control target key start
LH: loop header
LB: loop body
LE: loop exit
PB: predicated region body
PF: predicated region fallthrough
CT: control target
= control target key end

     0   :  { %8 = vsyncpa [#allocation3], 0  ;;  %s456_s0 = inlined_call_operand.hbm [shape: f32[1,256], index: 0, kind: input, shape index: {}]   ;;  %s457_s1 = inlined_call_operand.hbm [shape: bf16[256,128], index: 1, kind: input, shape index: {}]   ;;  %s458_s2 = inlined_call_operand.vmem [shape: f32[1,128], index: 2, kind: input, shape index: {}]   ;;  %s459_s3 = inlined_call_operand.hbm [shape: f32[1,128], index: 3, kind: output, shape index: {}]  }
   0x1   :  { %9 = vsyncpa [#allocation6], 0 }
   0x2   :  { %10 = vsyncpa [#allocation4], 0  ;;  %s385_s12 = smov [#allocation2]   ;;  %s386_s14 = smov [#allocation5]  }
   0x3   :  { %s17_s13 = sshll.u32 %s385_s12, 4  ;;  %s26_s15 = sshll.u32 %s386_s14, 4  ;;  %s18_s13 = int_to_ptr.vmem [resolvable:$true] %s17_s13  ;;  %s410_s15 = int_to_ptr.vmem [resolvable:$true] %s26_s15 }
   0x4   :  { %s313_s18 = scalar_lea.hbm %s456_s0, 32 }
   0x5   :  { %p314_p0 = scmp.ne.s32.totalorder %s456_s0, %s313_s18  ;;  %p317_p1 = scmp.lt.u32.totalorder %s313_s18, %s456_s0 }
   0x7   :  { %p319_p2 = pnand %p317_p1, %p314_p0 }
   0x9   :  { %322 = shalt.err (!%p319_p2)
}
   0xa   :  { %s323_s23 = scalar_lea.vmem %s18_s13, 32  ;;  %p328_p4 = scmp.lt.s32.totalorder %s18_s13, %s18_s13 }
   0xb   :  { %p324_p3 = scmp.ne.s32.totalorder %s18_s13, %s323_s23  ;;  %p329_p5 = scmp.lt.s32.totalorder %s323_s23, %s323_s23 }
   0xd   :  { %p330_p6 = por %p329_p5, %p328_p4 }
   0xf   :  { %p331_p7 = pnand %p330_p6, %p324_p3 }
  0x11   :  { %334 = shalt.err (!%p331_p7)
}
  0x12   :  { %20 = dma.hbm_to_vmem [thread:$0]  %s456_s0, 32, %s18_s13, [#allocation3]  }
  0x13   :  { %s335_s28 = scalar_lea.hbm %s457_s1, 2048 }
  0x14   :  { %p336_p8 = scmp.ne.s32.totalorder %s457_s1, %s335_s28  ;;  %p339_p9 = scmp.lt.u32.totalorder %s335_s28, %s457_s1 }
  0x16   :  { %p341_p10 = pnand %p339_p9, %p336_p8 }
  0x18   :  { %344 = shalt.err (!%p341_p10)
}
  0x19   :  { %s345_s6 = scalar_lea.vmem %s410_s15, 2048  ;;  %p350_p12 = scmp.lt.s32.totalorder %s410_s15, %s410_s15 }
  0x1a   :  { %p346_p11 = scmp.ne.s32.totalorder %s410_s15, %s345_s6  ;;  %p351_p13 = scmp.lt.s32.totalorder %s345_s6, %s345_s6 }
  0x1c   :  { %p352_p0 = por %p351_p13, %p350_p12 }
  0x1e   :  { %p353_p1 = pnand %p352_p0, %p346_p11 }
  0x20   :  { %356 = shalt.err (!%p353_p1)
}
  0x21   :  { %s387_s0 = smov 64   ;;  %s388_s7 = smov 4  }
  0x22   :  { %32 = dma.hbm_to_vmem [thread:$0]  %s457_s1, 2048, %s410_s15, [#allocation6], %s387_s0, %s387_s0, %s388_s7  }
  0x23   :  { %379 = dma.done.wait [#allocation3], 32  }
  0x24   :  { %380 = vsyncadd [#allocation3], 4294967264 }
  0x25   :  { %381 = dma.done.wait [#allocation6], 2048  }
  0x26   :  { %382 = vsyncadd [#allocation6], 4294965248  ;;  %v297_v0 = vld [vmem:[#allocation5 + $0x40] sm:$0xff]   ;;  %v299_v2 = vld [vmem:[#allocation5 + $0x48] sm:$0xff]   ;;  %v48_v9 = vlaneseq  ;;  %s389_s11 = smov [#allocation7]  }
  0x27   :  { %v298_v1 = vld [vmem:[#allocation5] sm:$0xff]   ;;  %268 = vmatprep.subr.bf16.mxu0 %v297_v0  ;;  %v300_v3 = vld [vmem:[#allocation5 + $0x8] sm:$0xff]   ;;  %v301_v4 = vld [vmem:[#allocation5 + $0x50] sm:$0xff]   ;;  %s242_s12 = sshll.u32 %s389_s11, 4  ;;  %s243_s12 = int_to_ptr.vmem [resolvable:$true] %s242_s12 }
  0x28   :  { %269 = vmatpush3.bf16.msra.mxu0 %v298_v1  ;;  %v302_v5 = vld [vmem:[#allocation5 + $0x10] sm:$0xff]   ;;  %v303_v6 = vld [vmem:[#allocation5 + $0x58] sm:$0xff]   ;;  %v305_v8 = vld [vmem:[#allocation5 + $0x60] sm:$0xff]   ;;  %v49_v14 = vshrl.u32 %v48_v9, 7  ;;  %s357_s13 = scalar_lea.vmem %s243_s12, 16  ;;  %s361_s14 = scalar_lea.vmem %s243_s12, 32 }
  0x29   :  { %270 = vmatprep.subr.bf16.mxu0 %v299_v2  ;;  %v304_v7 = vld [vmem:[#allocation5 + $0x18] sm:$0xff]   ;;  %v306_v10 = vld [vmem:[#allocation5 + $0x20] sm:$0xff]   ;;  %v307_v11 = vld [vmem:[#allocation5 + $0x68] sm:$0xff]   ;;  %p358_p2 = scmp.ne.s32.totalorder %s243_s12, %s357_s13  ;;  %p362_p3 = scmp.lt.s32.totalorder %s243_s12, %s243_s12 }
  0x2a   :  { %v42_v12 = vld [vmem:[#allocation2] sm:$0x3]  ;;  %v308_v15 = vld [vmem:[#allocation5 + $0x28] sm:$0xff]   ;;  %v309_v17 = vld [vmem:[#allocation5 + $0x70] sm:$0xff]   ;;  %v54_v19 = vsub.s32 1, %v49_v14  ;;  %v50_v20 = vsub.s32 0, %v49_v14  ;;  %p363_p4 = scmp.lt.s32.totalorder %s361_s14, %s357_s13 }
  0x2b   :  { %v43_v13 = vmul.f32 43.299778, %v42_v12  ;;  %v310_v21 = vld [vmem:[#allocation5 + $0x30] sm:$0xff]   ;;  %v311_v23 = vld [vmem:[#allocation5 + $0x78] sm:$0xff]  }
  0x2c   :  { %271 = vmatpush3.bf16.msra.mxu0 %v300_v3  ;;  %v312_v26 = vld [vmem:[#allocation5 + $0x38] sm:$0xff]   ;;  %p364_p5 = por %p363_p4, %p362_p3 }
  0x2d   :  { %272 = vmatprep.subr.bf16.mxu0 %v301_v4  ;;  %v290_v16 = vround.rtne.f32 %v43_v13  ;;  %v229_v33 = vld [vmem:[%s458_s2] sm:$0x1] }
  0x2e   :  { %p365_p6 = pnand %p364_p5, %p358_p2 }
  0x2f   :  { %v45_v18 = vmax.f32 %v290_v16, -126.0 }
  0x30   :  { %273 = vmatpush3.bf16.msra.mxu0 %v302_v5 }
  0x31   :  { %274 = vmatprep.subr.bf16.mxu0 %v303_v6  ;;  %v46_v22 = vmin.f32 %v45_v18, 129.0 }
  0x33   :  { %v55_v24 = vrot.slane %v46_v22, %v54_v19  ;;  %v51_v25 = vrot.slane %v46_v22, %v50_v20 }
  0x34   :  { %275 = vmatpush3.bf16.msra.mxu0 %v304_v7 }
  0x35   :  { %276 = vmatprep.subr.bf16.mxu0 %v305_v8  ;;  %v59_v27 = vpack.c.bf16 %v55_v24, %v55_v24  ;;  %v58_v28 = vpack.c.bf16 %v51_v25, %v51_v25 }
  0x37   :  { %220 = vmatprep.mubr.bf16.mxu0 %v59_v27 }
  0x38   :  { %277 = vmatpush3.bf16.msra.mxu0 %v306_v10 }
  0x39   :  { %278 = vmatprep.subr.bf16.mxu0 %v307_v11 }
  0x3c   :  { %279 = vmatpush3.bf16.msra.mxu0 %v308_v15 }
  0x3d   :  { %280 = vmatprep.subr.bf16.mxu0 %v309_v17 }
  0x40   :  { %281 = vmatpush3.bf16.msra.mxu0 %v310_v21 }
  0x41   :  { %282 = vmatprep.subr.bf16.mxu0 %v311_v23 }
  0x44   :  { %283 = vmatpush3.bf16.msra.mxu0 %v312_v26 }
  0x47   :  { %221 = vmatmul.mubr.bf16.vlgmr.msra.gmra.mrb[0].mxu0 %v58_v28 }
 0x11a   :  { %v284_v29 = vpop.f32.mrb[0].mxu0 }
 0x11b   :  { %v285_v30 = vpop.f32.mrb[1].mxu0 }
 0x11c   :  { %v286_v31 = vadd.f32 %v285_v30, %v284_v29  ;;  %v287_v32 = vpop.f32.mrb[2].mxu0 }
 0x11d   :  { %v288_v34 = vpop.f32.mrb[3].mxu0 }
 0x11e   :  { %v228_v35 = vmul.f32 0.0028146196, %v286_v31 }
 0x120   :  { %v230_v36 = vadd.f32 %v229_v33, %v228_v35 }
 0x122   :  { %v291_v37 = vround.rtne.f32 %v230_v36 }
 0x124   :  { %v232_v38 = vmax.f32 %v291_v37, -137.0 }
 0x126   :  { %v233_v39 = vmin.f32 %v232_v38, 118.0 }
 0x128   :  { %v234_v40 = vmul.f32 0.015916549, %v233_v39 }
 0x12a   :  { %235 = vst [vmem:[#allocation7] sm:$0x1] %v234_v40 }
 0x12b   :  { %368 = shalt.err (!%p365_p6)
}
 0x12c   :  { %s369_s16 = scalar_lea.hbm %s459_s3, 16 }
 0x12d   :  { %p370_p7 = scmp.ne.s32.totalorder %s459_s3, %s369_s16  ;;  %p373_p8 = scmp.lt.u32.totalorder %s369_s16, %s459_s3 }
 0x12f   :  { %p375_p9 = pnand %p373_p8, %p370_p7 }
 0x131   :  { %378 = shalt.err (!%p375_p9)
}
 0x132   :  { %245 = dma.vmem_to_hbm [thread:$0]  %s243_s12, 16, %s459_s3, [#allocation4]  }
 0x133   :  { %383 = dma.done.wait [#allocation4], 16  }
 0x134   :  { %384 = vsyncadd [#allocation4], 4294967280 }
 0x135   :  { %249 = vsyncpa [#allocation3], 1 }
 0x136   :  { %250 = vsyncpa [#allocation6], 1 }
 0x137   :  { %251 = vsyncpa [#allocation4], 1 }

</bundles_post_ra>
